<compile_context>
chip_gen: v5e
topology: v5e:2x2
jax: 0.10.0
libtpu: 0.0.40
codegen_flags: <defaults>
</compile_context>

<pallas_src>
import math

import jax
import jax.numpy as jnp
import numpy as np
from jax.experimental import pallas as pl
from jax.experimental.pallas import tpu as pltpu

_LANE = 128


def _acos(x):
    """acos via Abramowitz & Stegun 4.4.46 polynomial (|abs err| ~2e-8)."""
    ax = jnp.abs(x)
    p = jnp.float32(-0.0012624911)
    p = p * ax + jnp.float32(0.0066700901)
    p = p * ax + jnp.float32(-0.0170881256)
    p = p * ax + jnp.float32(0.0308918810)
    p = p * ax + jnp.float32(-0.0501743046)
    p = p * ax + jnp.float32(0.0889789874)
    p = p * ax + jnp.float32(-0.2145988016)
    p = p * ax + jnp.float32(1.5707963050)
    r = p * jnp.sqrt(jnp.maximum(jnp.float32(1.0) - ax, jnp.float32(0.0)))
    return jnp.where(x < 0, jnp.float32(math.pi) - r, r)


def _make_loss_kernel(b_total, d, tb):
    """Kernel factory; b_total / d / tb are static Python ints baked in."""

    def kernel(rl_ref, rr_ref, ll_ref, lr_ref, probl_ref, probr_ref,
               le_ref, lar_ref, lar2_ref, acc_ref):
        i = pl.program_id(0)
        nt = pl.num_programs(0)

        @pl.when(i == 0)
        def _():
            acc_ref[...] = jnp.zeros_like(acc_ref)

        rl = rl_ref[...]          # (D, TB), batch on lanes
        rr = rr_ref[...]
        ll = ll_ref[...]
        lr = lr_ref[...]
        probl = probl_ref[...]    # (1, TB)
        probr = probr_ref[...]

        one = jnp.float32(1.0)
        two = jnp.float32(2.0)

        def rowdot(a, b):
            # Unrolled sum over the tiny static D rows -> (1, TB).
            s = a[0:1, :] * b[0:1, :]
            for dd in range(1, d):
                s = s + a[dd:dd + 1, :] * b[dd:dd + 1, :]
            return s

        # Squared norms computed once and reused for all three angles.
        n_rl = rowdot(rl, rl)
        n_rr = rowdot(rr, rr)
        n_ll = rowdot(ll, ll)
        n_lr = rowdot(lr, lr)
        up_l = rowdot(rl, ll)
        up_r = rowdot(rr, lr)
        up_lr = rowdot(rl, rr)

        # cos = up * rsqrt(na * nb)  (rsqrt uses the EUP slot).
        angle_l = _acos(jnp.clip(up_l * jax.lax.rsqrt(n_rl * n_ll), -one, one))
        angle_r = _acos(jnp.clip(up_r * jax.lax.rsqrt(n_rr * n_lr), -one, one))
        angle_lr = _acos(jnp.clip(up_lr * jax.lax.rsqrt(n_rl * n_rr), -one, one))

        # L_AR element: 2 * a_r * a_l / (a_r + a_l + 1e-4)
        l_ar_elem = (two * angle_r * angle_l) * pl.reciprocal(
            angle_r + angle_l + jnp.float32(1e-4))

        # L_E element
        mat_b = (angle_l <= angle_r).astype(jnp.float32)
        log_pl = jnp.log(jnp.clip(probl, jnp.float32(1e-30),
                                  jnp.float32(0.99999999)))
        log_pr = jnp.log(jnp.clip(probr, jnp.float32(1e-30),
                                  jnp.float32(0.99999999)))
        l_e_elem = -(angle_lr * (mat_b * log_pl + (one - mat_b) * log_pr))

        # L_AR2 element: omega * L_AR_ + 0.1 * (1 - omega) * (a_r + a_l) / 2
        omega = (one + (two * mat_b - one) * probl
                 + (one - two * mat_b) * probr) * jnp.float32(0.5)
        l_ar2_elem = (omega * l_ar_elem
                      + jnp.float32(0.05) * (one - omega) * (angle_r + angle_l))

        # Mask out lane-padded samples (pad values are benign/finite, so a
        # multiply-by-0 is exact and NaN-free).
        lane = jax.lax.broadcasted_iota(jnp.int32, (1, tb), 1)
        valid = ((i * tb + lane) < b_total).astype(jnp.float32)

        acc_ref[0:1, :] = acc_ref[0:1, :] + l_e_elem * valid
        acc_ref[1:2, :] = acc_ref[1:2, :] + l_ar_elem * valid
        acc_ref[2:3, :] = acc_ref[2:3, :] + l_ar2_elem * valid

        # Store the three scalars once, at the final grid step.
        @pl.when(i == nt - 1)
        def _():
            le_ref[...] = jnp.sum(acc_ref[0:1, :], keepdims=True)
            lar_ref[...] = jnp.sum(acc_ref[1:2, :], keepdims=True)
            lar2_ref[...] = jnp.sum(acc_ref[2:3, :], keepdims=True)

    return kernel


def loss_f(result_l, result_r, label_l, label_r, prob_l, prob_r, *,
           tile_b=8192):
    """Pallas equivalent of loss_f.forward. Returns (L_E, L_AR, L_AR2) scalars."""
    B, D = result_l.shape
    assert tile_b % _LANE == 0

    # Pad batch to a multiple of the lane width, then to a multiple of the tile.
    bp = ((B + _LANE - 1) // _LANE) * _LANE
    tb = min(tile_b, bp)
    bp = ((bp + tb - 1) // tb) * tb
    num_tiles = bp // tb
    pad = bp - B

    def prep_vec(x):
        # (B, D) -> (D, B) lane-dense; pad batch with ones (finite angles).
        x = jnp.asarray(x, jnp.float32).T
        return jnp.pad(x, ((0, 0), (0, pad)), constant_values=1.0)

    def prep_prob(p):
        p = jnp.asarray(p, jnp.float32).reshape(1, B)
        return jnp.pad(p, ((0, 0), (0, pad)), constant_values=0.5)

    vec_spec = pl.BlockSpec((D, tb), lambda i: (0, i))
    prob_spec = pl.BlockSpec((1, tb), lambda i: (0, i))
    out_spec = pl.BlockSpec((1, 1), lambda i: (0, 0))
    out_shape = jax.ShapeDtypeStruct((1, 1), jnp.float32)

    le, lar, lar2 = pl.pallas_call(
        _make_loss_kernel(B, D, tb),
        out_shape=(out_shape, out_shape, out_shape),
        grid_spec=pltpu.PrefetchScalarGridSpec(
            num_scalar_prefetch=0,
            grid=(num_tiles,),
            in_specs=[vec_spec, vec_spec, vec_spec, vec_spec,
                      prob_spec, prob_spec],
            out_specs=(out_spec, out_spec, out_spec),
            scratch_shapes=[pltpu.VMEM((3, tb), jnp.float32)],
        ),
        compiler_params=pltpu.CompilerParams(
            dimension_semantics=("arbitrary",)),
    )(prep_vec(result_l), prep_vec(result_r),
      prep_vec(label_l), prep_vec(label_r),
      prep_prob(prob_l), prep_prob(prob_r))

    return le[0, 0], lar[0, 0], lar2[0, 0]


def _reference(result_l, result_r, label_l, label_r, prob_l, prob_r):
    """Pure-JAX transcription of the PyTorch forward (for verification)."""
    up_l = jnp.sum(result_l * label_l, 1)
    d_l = jnp.sqrt(jnp.sum(result_l ** 2, 1)) * jnp.sqrt(jnp.sum(label_l ** 2, 1))
    ang_l = jnp.arccos(jnp.clip(up_l / d_l, -1.0, 1.0))
    up_r = jnp.sum(result_r * label_r, 1)
    d_r = jnp.sqrt(jnp.sum(result_r ** 2, 1)) * jnp.sqrt(jnp.sum(label_r ** 2, 1))
    ang_r = jnp.arccos(jnp.clip(up_r / d_r, -1.0, 1.0))
    l_ar_ = 2 * ang_r * ang_l / (ang_r + ang_l + 1e-4)
    l_ar = jnp.sum(l_ar_, 0)
    mat_b = (ang_l <= ang_r).astype(jnp.float32)
    le_up = jnp.sum(result_l * result_r, 1)
    le_down = jnp.sqrt(jnp.sum(result_l ** 2, 1)) * jnp.sqrt(jnp.sum(result_r ** 2, 1))
    ang_lr = jnp.arccos(jnp.clip(le_up / le_down, -1.0, 1.0))
    l_e128 = -(mat_b * ang_lr * jnp.log(jnp.clip(prob_l, 1e-30, 0.99999999)) +
               (1 - mat_b) * ang_lr * jnp.log(jnp.clip(prob_r, 1e-30, 0.99999999)))
    l_e = jnp.sum(l_e128, 0)
    omega = (1 + (2 * mat_b - 1) * prob_l + (1 - 2 * mat_b) * prob_r) / 2
    l_ar2_ = omega * l_ar_ + 0.1 * (1 - omega) * (ang_r + ang_l) / 2
    l_ar2 = jnp.sum(l_ar2_, 0)
    return l_e, l_ar, l_ar2


def _check(B, D, seed, tile_b):
    key = jax.random.PRNGKey(seed)
    k1, k2, k3, k4, k5, k6 = jax.random.split(key, 6)
    result_l = jax.random.normal(k1, (B, D), dtype=jnp.float32)
    result_r = jax.random.normal(k2, (B, D), dtype=jnp.float32)
    label_l = jax.random.normal(k3, (B, D), dtype=jnp.float32)
    label_r = jax.random.normal(k4, (B, D), dtype=jnp.float32)
    prob_l = jax.random.uniform(k5, (B,), dtype=jnp.float32, minval=0.01, maxval=0.99)
    prob_r = jax.random.uniform(k6, (B,), dtype=jnp.float32, minval=0.01, maxval=0.99)

    l_e, l_ar, l_ar2 = loss_f(result_l, result_r, label_l, label_r,
                              prob_l, prob_r, tile_b=tile_b)
    jax.block_until_ready((l_e, l_ar, l_ar2))

    ref_e, ref_ar, ref_ar2 = _reference(result_l, result_r, label_l, label_r,
                                        prob_l, prob_r)
    np.testing.assert_allclose(np.asarray(l_e), np.asarray(ref_e),
                               rtol=1e-5, atol=1e-4)
    np.testing.assert_allclose(np.asarray(l_ar), np.asarray(ref_ar),
                               rtol=1e-5, atol=1e-4)
    np.testing.assert_allclose(np.asarray(l_ar2), np.asarray(ref_ar2),
                               rtol=1e-5, atol=1e-4)


if __name__ == "__main__":
    # Small case (batch of 8, 3-D gaze vectors): single tile, lane padding.
    _check(B=8, D=3, seed=0, tile_b=8192)
    # Multi-tile case: exercises the grid accumulator + padded-lane masking.
    _check(B=300, D=3, seed=0, tile_b=128)
    print("KERNEL_OK")
</pallas_src>

<mosaic_0001>
module attributes {stable_mosaic.version = 11 : i64} {
  func.func @kernel(%arg0: i32, %arg1: memref<3x128xf32, #tpu.memory_space<vmem>>, %arg2: memref<3x128xf32, #tpu.memory_space<vmem>>, %arg3: memref<3x128xf32, #tpu.memory_space<vmem>>, %arg4: memref<3x128xf32, #tpu.memory_space<vmem>>, %arg5: memref<1x128xf32, #tpu.memory_space<vmem>>, %arg6: memref<1x128xf32, #tpu.memory_space<vmem>>, %arg7: memref<1x1xf32, #tpu.memory_space<vmem>>, %arg8: memref<1x1xf32, #tpu.memory_space<vmem>>, %arg9: memref<1x1xf32, #tpu.memory_space<vmem>>, %arg10: memref<3x128xf32, #tpu.memory_space<vmem>>) attributes {dimension_semantics = [#tpu.dimension_semantics<arbitrary>], iteration_bounds = array<i64: 1>, scalar_prefetch = 0 : i64, scratch_operands = 1 : i64, tpu.core_type = #tpu.core_type<tc>, window_params = [{transform_indices = @transform_0, window_bounds = array<i64: 3, 128>}, {transform_indices = @transform_1, window_bounds = array<i64: 3, 128>}, {transform_indices = @transform_2, window_bounds = array<i64: 3, 128>}, {transform_indices = @transform_3, window_bounds = array<i64: 3, 128>}, {transform_indices = @transform_4, window_bounds = array<i64: 1, 128>}, {transform_indices = @transform_5, window_bounds = array<i64: 1, 128>}, {pipeline_mode = #tpu.pipeline_mode<synchronous>, transform_indices = @transform_6, window_bounds = array<i64: 1, 1>}, {pipeline_mode = #tpu.pipeline_mode<synchronous>, transform_indices = @transform_7, window_bounds = array<i64: 1, 1>}, {pipeline_mode = #tpu.pipeline_mode<synchronous>, transform_indices = @transform_8, window_bounds = array<i64: 1, 1>}]} {
    %c0_i32 = arith.constant 0 : i32
    %0 = arith.cmpi eq, %arg0, %c0_i32 : i32
    %1 = arith.extui %0 : i1 to i32
    %c0_i32_0 = arith.constant 0 : i32
    %2 = arith.cmpi ne, %1, %c0_i32_0 : i32
    scf.if %2 {
      %cst_84 = arith.constant 0.000000e+00 : f32
      %287 = vector.broadcast %cst_84 : f32 to vector<3x128xf32>
      %c0_85 = arith.constant 0 : index
      %c0_86 = arith.constant 0 : index
      %288 = vector.load %arg10[%c0_85, %c0_86] : memref<3x128xf32, #tpu.memory_space<vmem>>, vector<3x128xf32>
      tpu.vector_store %arg10[%c0_85, %c0_86], %287 {strides = array<i32>} : memref<3x128xf32, #tpu.memory_space<vmem>>, vector<3x128xf32>,
    } else {
    }
    %c0 = arith.constant 0 : index
    %c0_1 = arith.constant 0 : index
    %3 = vector.load %arg1[%c0, %c0_1] : memref<3x128xf32, #tpu.memory_space<vmem>>, vector<3x128xf32>
    %c0_2 = arith.constant 0 : index
    %c0_3 = arith.constant 0 : index
    %4 = vector.load %arg2[%c0_2, %c0_3] : memref<3x128xf32, #tpu.memory_space<vmem>>, vector<3x128xf32>
    %c0_4 = arith.constant 0 : index
    %c0_5 = arith.constant 0 : index
    %5 = vector.load %arg3[%c0_4, %c0_5] : memref<3x128xf32, #tpu.memory_space<vmem>>, vector<3x128xf32>
    %c0_6 = arith.constant 0 : index
    %c0_7 = arith.constant 0 : index
    %6 = vector.load %arg4[%c0_6, %c0_7] : memref<3x128xf32, #tpu.memory_space<vmem>>, vector<3x128xf32>
    %c0_8 = arith.constant 0 : index
    %c0_9 = arith.constant 0 : index
    %7 = vector.load %arg5[%c0_8, %c0_9] : memref<1x128xf32, #tpu.memory_space<vmem>>, vector<1x128xf32>
    %c0_10 = arith.constant 0 : index
    %c0_11 = arith.constant 0 : index
    %8 = vector.load %arg6[%c0_10, %c0_11] : memref<1x128xf32, #tpu.memory_space<vmem>>, vector<1x128xf32>
    %9 = vector.extract_strided_slice %3 {offsets = [0, 0], sizes = [1, 128], strides = [1, 1]} : vector<3x128xf32> to vector<1x128xf32>
    %10 = vector.extract_strided_slice %3 {offsets = [0, 0], sizes = [1, 128], strides = [1, 1]} : vector<3x128xf32> to vector<1x128xf32>
    %11 = arith.mulf %9, %10 : vector<1x128xf32>
    %12 = vector.extract_strided_slice %3 {offsets = [1, 0], sizes = [1, 128], strides = [1, 1]} : vector<3x128xf32> to vector<1x128xf32>
    %13 = vector.extract_strided_slice %3 {offsets = [1, 0], sizes = [1, 128], strides = [1, 1]} : vector<3x128xf32> to vector<1x128xf32>
    %14 = arith.mulf %12, %13 : vector<1x128xf32>
    %15 = arith.addf %11, %14 : vector<1x128xf32>
    %16 = vector.extract_strided_slice %3 {offsets = [2, 0], sizes = [1, 128], strides = [1, 1]} : vector<3x128xf32> to vector<1x128xf32>
    %17 = vector.extract_strided_slice %3 {offsets = [2, 0], sizes = [1, 128], strides = [1, 1]} : vector<3x128xf32> to vector<1x128xf32>
    %18 = arith.mulf %16, %17 : vector<1x128xf32>
    %19 = arith.addf %15, %18 : vector<1x128xf32>
    %20 = vector.extract_strided_slice %4 {offsets = [0, 0], sizes = [1, 128], strides = [1, 1]} : vector<3x128xf32> to vector<1x128xf32>
    %21 = vector.extract_strided_slice %4 {offsets = [0, 0], sizes = [1, 128], strides = [1, 1]} : vector<3x128xf32> to vector<1x128xf32>
    %22 = arith.mulf %20, %21 : vector<1x128xf32>
    %23 = vector.extract_strided_slice %4 {offsets = [1, 0], sizes = [1, 128], strides = [1, 1]} : vector<3x128xf32> to vector<1x128xf32>
    %24 = vector.extract_strided_slice %4 {offsets = [1, 0], sizes = [1, 128], strides = [1, 1]} : vector<3x128xf32> to vector<1x128xf32>
    %25 = arith.mulf %23, %24 : vector<1x128xf32>
    %26 = arith.addf %22, %25 : vector<1x128xf32>
    %27 = vector.extract_strided_slice %4 {offsets = [2, 0], sizes = [1, 128], strides = [1, 1]} : vector<3x128xf32> to vector<1x128xf32>
    %28 = vector.extract_strided_slice %4 {offsets = [2, 0], sizes = [1, 128], strides = [1, 1]} : vector<3x128xf32> to vector<1x128xf32>
    %29 = arith.mulf %27, %28 : vector<1x128xf32>
    %30 = arith.addf %26, %29 : vector<1x128xf32>
    %31 = vector.extract_strided_slice %5 {offsets = [0, 0], sizes = [1, 128], strides = [1, 1]} : vector<3x128xf32> to vector<1x128xf32>
    %32 = vector.extract_strided_slice %5 {offsets = [0, 0], sizes = [1, 128], strides = [1, 1]} : vector<3x128xf32> to vector<1x128xf32>
    %33 = arith.mulf %31, %32 : vector<1x128xf32>
    %34 = vector.extract_strided_slice %5 {offsets = [1, 0], sizes = [1, 128], strides = [1, 1]} : vector<3x128xf32> to vector<1x128xf32>
    %35 = vector.extract_strided_slice %5 {offsets = [1, 0], sizes = [1, 128], strides = [1, 1]} : vector<3x128xf32> to vector<1x128xf32>
    %36 = arith.mulf %34, %35 : vector<1x128xf32>
    %37 = arith.addf %33, %36 : vector<1x128xf32>
    %38 = vector.extract_strided_slice %5 {offsets = [2, 0], sizes = [1, 128], strides = [1, 1]} : vector<3x128xf32> to vector<1x128xf32>
    %39 = vector.extract_strided_slice %5 {offsets = [2, 0], sizes = [1, 128], strides = [1, 1]} : vector<3x128xf32> to vector<1x128xf32>
    %40 = arith.mulf %38, %39 : vector<1x128xf32>
    %41 = arith.addf %37, %40 : vector<1x128xf32>
    %42 = vector.extract_strided_slice %6 {offsets = [0, 0], sizes = [1, 128], strides = [1, 1]} : vector<3x128xf32> to vector<1x128xf32>
    %43 = vector.extract_strided_slice %6 {offsets = [0, 0], sizes = [1, 128], strides = [1, 1]} : vector<3x128xf32> to vector<1x128xf32>
    %44 = arith.mulf %42, %43 : vector<1x128xf32>
    %45 = vector.extract_strided_slice %6 {offsets = [1, 0], sizes = [1, 128], strides = [1, 1]} : vector<3x128xf32> to vector<1x128xf32>
    %46 = vector.extract_strided_slice %6 {offsets = [1, 0], sizes = [1, 128], strides = [1, 1]} : vector<3x128xf32> to vector<1x128xf32>
    %47 = arith.mulf %45, %46 : vector<1x128xf32>
    %48 = arith.addf %44, %47 : vector<1x128xf32>
    %49 = vector.extract_strided_slice %6 {offsets = [2, 0], sizes = [1, 128], strides = [1, 1]} : vector<3x128xf32> to vector<1x128xf32>
    %50 = vector.extract_strided_slice %6 {offsets = [2, 0], sizes = [1, 128], strides = [1, 1]} : vector<3x128xf32> to vector<1x128xf32>
    %51 = arith.mulf %49, %50 : vector<1x128xf32>
    %52 = arith.addf %48, %51 : vector<1x128xf32>
    %53 = vector.extract_strided_slice %3 {offsets = [0, 0], sizes = [1, 128], strides = [1, 1]} : vector<3x128xf32> to vector<1x128xf32>
    %54 = vector.extract_strided_slice %5 {offsets = [0, 0], sizes = [1, 128], strides = [1, 1]} : vector<3x128xf32> to vector<1x128xf32>
    %55 = arith.mulf %53, %54 : vector<1x128xf32>
    %56 = vector.extract_strided_slice %3 {offsets = [1, 0], sizes = [1, 128], strides = [1, 1]} : vector<3x128xf32> to vector<1x128xf32>
    %57 = vector.extract_strided_slice %5 {offsets = [1, 0], sizes = [1, 128], strides = [1, 1]} : vector<3x128xf32> to vector<1x128xf32>
    %58 = arith.mulf %56, %57 : vector<1x128xf32>
    %59 = arith.addf %55, %58 : vector<1x128xf32>
    %60 = vector.extract_strided_slice %3 {offsets = [2, 0], sizes = [1, 128], strides = [1, 1]} : vector<3x128xf32> to vector<1x128xf32>
    %61 = vector.extract_strided_slice %5 {offsets = [2, 0], sizes = [1, 128], strides = [1, 1]} : vector<3x128xf32> to vector<1x128xf32>
    %62 = arith.mulf %60, %61 : vector<1x128xf32>
    %63 = arith.addf %59, %62 : vector<1x128xf32>
    %64 = vector.extract_strided_slice %4 {offsets = [0, 0], sizes = [1, 128], strides = [1, 1]} : vector<3x128xf32> to vector<1x128xf32>
    %65 = vector.extract_strided_slice %6 {offsets = [0, 0], sizes = [1, 128], strides = [1, 1]} : vector<3x128xf32> to vector<1x128xf32>
    %66 = arith.mulf %64, %65 : vector<1x128xf32>
    %67 = vector.extract_strided_slice %4 {offsets = [1, 0], sizes = [1, 128], strides = [1, 1]} : vector<3x128xf32> to vector<1x128xf32>
    %68 = vector.extract_strided_slice %6 {offsets = [1, 0], sizes = [1, 128], strides = [1, 1]} : vector<3x128xf32> to vector<1x128xf32>
    %69 = arith.mulf %67, %68 : vector<1x128xf32>
    %70 = arith.addf %66, %69 : vector<1x128xf32>
    %71 = vector.extract_strided_slice %4 {offsets = [2, 0], sizes = [1, 128], strides = [1, 1]} : vector<3x128xf32> to vector<1x128xf32>
    %72 = vector.extract_strided_slice %6 {offsets = [2, 0], sizes = [1, 128], strides = [1, 1]} : vector<3x128xf32> to vector<1x128xf32>
    %73 = arith.mulf %71, %72 : vector<1x128xf32>
    %74 = arith.addf %70, %73 : vector<1x128xf32>
    %75 = vector.extract_strided_slice %3 {offsets = [0, 0], sizes = [1, 128], strides = [1, 1]} : vector<3x128xf32> to vector<1x128xf32>
    %76 = vector.extract_strided_slice %4 {offsets = [0, 0], sizes = [1, 128], strides = [1, 1]} : vector<3x128xf32> to vector<1x128xf32>
    %77 = arith.mulf %75, %76 : vector<1x128xf32>
    %78 = vector.extract_strided_slice %3 {offsets = [1, 0], sizes = [1, 128], strides = [1, 1]} : vector<3x128xf32> to vector<1x128xf32>
    %79 = vector.extract_strided_slice %4 {offsets = [1, 0], sizes = [1, 128], strides = [1, 1]} : vector<3x128xf32> to vector<1x128xf32>
    %80 = arith.mulf %78, %79 : vector<1x128xf32>
    %81 = arith.addf %77, %80 : vector<1x128xf32>
    %82 = vector.extract_strided_slice %3 {offsets = [2, 0], sizes = [1, 128], strides = [1, 1]} : vector<3x128xf32> to vector<1x128xf32>
    %83 = vector.extract_strided_slice %4 {offsets = [2, 0], sizes = [1, 128], strides = [1, 1]} : vector<3x128xf32> to vector<1x128xf32>
    %84 = arith.mulf %82, %83 : vector<1x128xf32>
    %85 = arith.addf %81, %84 : vector<1x128xf32>
    %86 = arith.mulf %19, %41 : vector<1x128xf32>
    %87 = math.rsqrt %86 : vector<1x128xf32>
    %88 = arith.mulf %63, %87 : vector<1x128xf32>
    %cst = arith.constant 0.000000e+00 : f32
    %cst_12 = arith.constant 1.000000e+00 : f32
    %89 = arith.subf %cst, %cst_12 : f32
    %cst_13 = arith.constant 1.000000e+00 : f32
    %90 = vector.broadcast %89 : f32 to vector<1x128xf32>
    %91 = arith.maximumf %90, %88 : vector<1x128xf32>
    %92 = vector.broadcast %cst_13 : f32 to vector<1x128xf32>
    %93 = arith.minimumf %92, %91 : vector<1x128xf32>
    %94 = math.absf %93 : vector<1x128xf32>
    %cst_14 = arith.constant -0.0012624911 : f32
    %95 = vector.broadcast %cst_14 : f32 to vector<1x128xf32>
    %96 = arith.mulf %95, %94 : vector<1x128xf32>
    %cst_15 = arith.constant 6.670090e-03 : f32
    %97 = vector.broadcast %cst_15 : f32 to vector<1x128xf32>
    %98 = arith.addf %96, %97 : vector<1x128xf32>
    %99 = arith.mulf %98, %94 : vector<1x128xf32>
    %cst_16 = arith.constant -0.0170881264 : f32
    %100 = vector.broadcast %cst_16 : f32 to vector<1x128xf32>
    %101 = arith.addf %99, %100 : vector<1x128xf32>
    %102 = arith.mulf %101, %94 : vector<1x128xf32>
    %cst_17 = arith.constant 0.0308918804 : f32
    %103 = vector.broadcast %cst_17 : f32 to vector<1x128xf32>
    %104 = arith.addf %102, %103 : vector<1x128xf32>
    %105 = arith.mulf %104, %94 : vector<1x128xf32>
    %cst_18 = arith.constant -0.0501743034 : f32
    %106 = vector.broadcast %cst_18 : f32 to vector<1x128xf32>
    %107 = arith.addf %105, %106 : vector<1x128xf32>
    %108 = arith.mulf %107, %94 : vector<1x128xf32>
    %cst_19 = arith.constant 0.0889789909 : f32
    %109 = vector.broadcast %cst_19 : f32 to vector<1x128xf32>
    %110 = arith.addf %108, %109 : vector<1x128xf32>
    %111 = arith.mulf %110, %94 : vector<1x128xf32>
    %cst_20 = arith.constant -0.214598805 : f32
    %112 = vector.broadcast %cst_20 : f32 to vector<1x128xf32>
    %113 = arith.addf %111, %112 : vector<1x128xf32>
    %114 = arith.mulf %113, %94 : vector<1x128xf32>
    %cst_21 = arith.constant 1.57079625 : f32
    %115 = vector.broadcast %cst_21 : f32 to vector<1x128xf32>
    %116 = arith.addf %114, %115 : vector<1x128xf32>
    %cst_22 = arith.constant 1.000000e+00 : f32
    %117 = vector.broadcast %cst_22 : f32 to vector<1x128xf32>
    %118 = arith.subf %117, %94 : vector<1x128xf32>
    %cst_23 = arith.constant 0.000000e+00 : f32
    %119 = vector.broadcast %cst_23 : f32 to vector<1x128xf32>
    %120 = arith.maximumf %118, %119 : vector<1x128xf32>
    %121 = math.sqrt %120 : vector<1x128xf32>
    %122 = arith.mulf %116, %121 : vector<1x128xf32>
    %cst_24 = arith.constant 0.000000e+00 : f32
    %123 = vector.broadcast %cst_24 : f32 to vector<1x128xf32>
    %124 = arith.cmpf olt, %93, %123 : vector<1x128xf32>
    %cst_25 = arith.constant 3.14159274 : f32
    %125 = vector.broadcast %cst_25 : f32 to vector<1x128xf32>
    %126 = arith.subf %125, %122 : vector<1x128xf32>
    %127 = arith.select %124, %126, %122 : vector<1x128xi1>, vector<1x128xf32>
    %128 = arith.mulf %30, %52 : vector<1x128xf32>
    %129 = math.rsqrt %128 : vector<1x128xf32>
    %130 = arith.mulf %74, %129 : vector<1x128xf32>
    %cst_26 = arith.constant 0.000000e+00 : f32
    %cst_27 = arith.constant 1.000000e+00 : f32
    %131 = arith.subf %cst_26, %cst_27 : f32
    %cst_28 = arith.constant 1.000000e+00 : f32
    %132 = vector.broadcast %131 : f32 to vector<1x128xf32>
    %133 = arith.maximumf %132, %130 : vector<1x128xf32>
    %134 = vector.broadcast %cst_28 : f32 to vector<1x128xf32>
    %135 = arith.minimumf %134, %133 : vector<1x128xf32>
    %136 = math.absf %135 : vector<1x128xf32>
    %cst_29 = arith.constant -0.0012624911 : f32
    %137 = vector.broadcast %cst_29 : f32 to vector<1x128xf32>
    %138 = arith.mulf %137, %136 : vector<1x128xf32>
    %cst_30 = arith.constant 6.670090e-03 : f32
    %139 = vector.broadcast %cst_30 : f32 to vector<1x128xf32>
    %140 = arith.addf %138, %139 : vector<1x128xf32>
    %141 = arith.mulf %140, %136 : vector<1x128xf32>
    %cst_31 = arith.constant -0.0170881264 : f32
    %142 = vector.broadcast %cst_31 : f32 to vector<1x128xf32>
    %143 = arith.addf %141, %142 : vector<1x128xf32>
    %144 = arith.mulf %143, %136 : vector<1x128xf32>
    %cst_32 = arith.constant 0.0308918804 : f32
    %145 = vector.broadcast %cst_32 : f32 to vector<1x128xf32>
    %146 = arith.addf %144, %145 : vector<1x128xf32>
    %147 = arith.mulf %146, %136 : vector<1x128xf32>
    %cst_33 = arith.constant -0.0501743034 : f32
    %148 = vector.broadcast %cst_33 : f32 to vector<1x128xf32>
    %149 = arith.addf %147, %148 : vector<1x128xf32>
    %150 = arith.mulf %149, %136 : vector<1x128xf32>
    %cst_34 = arith.constant 0.0889789909 : f32
    %151 = vector.broadcast %cst_34 : f32 to vector<1x128xf32>
    %152 = arith.addf %150, %151 : vector<1x128xf32>
    %153 = arith.mulf %152, %136 : vector<1x128xf32>
    %cst_35 = arith.constant -0.214598805 : f32
    %154 = vector.broadcast %cst_35 : f32 to vector<1x128xf32>
    %155 = arith.addf %153, %154 : vector<1x128xf32>
    %156 = arith.mulf %155, %136 : vector<1x128xf32>
    %cst_36 = arith.constant 1.57079625 : f32
    %157 = vector.broadcast %cst_36 : f32 to vector<1x128xf32>
    %158 = arith.addf %156, %157 : vector<1x128xf32>
    %cst_37 = arith.constant 1.000000e+00 : f32
    %159 = vector.broadcast %cst_37 : f32 to vector<1x128xf32>
    %160 = arith.subf %159, %136 : vector<1x128xf32>
    %cst_38 = arith.constant 0.000000e+00 : f32
    %161 = vector.broadcast %cst_38 : f32 to vector<1x128xf32>
    %162 = arith.maximumf %160, %161 : vector<1x128xf32>
    %163 = math.sqrt %162 : vector<1x128xf32>
    %164 = arith.mulf %158, %163 : vector<1x128xf32>
    %cst_39 = arith.constant 0.000000e+00 : f32
    %165 = vector.broadcast %cst_39 : f32 to vector<1x128xf32>
    %166 = arith.cmpf olt, %135, %165 : vector<1x128xf32>
    %cst_40 = arith.constant 3.14159274 : f32
    %167 = vector.broadcast %cst_40 : f32 to vector<1x128xf32>
    %168 = arith.subf %167, %164 : vector<1x128xf32>
    %169 = arith.select %166, %168, %164 : vector<1x128xi1>, vector<1x128xf32>
    %170 = arith.mulf %19, %30 : vector<1x128xf32>
    %171 = math.rsqrt %170 : vector<1x128xf32>
    %172 = arith.mulf %85, %171 : vector<1x128xf32>
    %cst_41 = arith.constant 0.000000e+00 : f32
    %cst_42 = arith.constant 1.000000e+00 : f32
    %173 = arith.subf %cst_41, %cst_42 : f32
    %cst_43 = arith.constant 1.000000e+00 : f32
    %174 = vector.broadcast %173 : f32 to vector<1x128xf32>
    %175 = arith.maximumf %174, %172 : vector<1x128xf32>
    %176 = vector.broadcast %cst_43 : f32 to vector<1x128xf32>
    %177 = arith.minimumf %176, %175 : vector<1x128xf32>
    %178 = math.absf %177 : vector<1x128xf32>
    %cst_44 = arith.constant -0.0012624911 : f32
    %179 = vector.broadcast %cst_44 : f32 to vector<1x128xf32>
    %180 = arith.mulf %179, %178 : vector<1x128xf32>
    %cst_45 = arith.constant 6.670090e-03 : f32
    %181 = vector.broadcast %cst_45 : f32 to vector<1x128xf32>
    %182 = arith.addf %180, %181 : vector<1x128xf32>
    %183 = arith.mulf %182, %178 : vector<1x128xf32>
    %cst_46 = arith.constant -0.0170881264 : f32
    %184 = vector.broadcast %cst_46 : f32 to vector<1x128xf32>
    %185 = arith.addf %183, %184 : vector<1x128xf32>
    %186 = arith.mulf %185, %178 : vector<1x128xf32>
    %cst_47 = arith.constant 0.0308918804 : f32
    %187 = vector.broadcast %cst_47 : f32 to vector<1x128xf32>
    %188 = arith.addf %186, %187 : vector<1x128xf32>
    %189 = arith.mulf %188, %178 : vector<1x128xf32>
    %cst_48 = arith.constant -0.0501743034 : f32
    %190 = vector.broadcast %cst_48 : f32 to vector<1x128xf32>
    %191 = arith.addf %189, %190 : vector<1x128xf32>
    %192 = arith.mulf %191, %178 : vector<1x128xf32>
    %cst_49 = arith.constant 0.0889789909 : f32
    %193 = vector.broadcast %cst_49 : f32 to vector<1x128xf32>
    %194 = arith.addf %192, %193 : vector<1x128xf32>
    %195 = arith.mulf %194, %178 : vector<1x128xf32>
    %cst_50 = arith.constant -0.214598805 : f32
    %196 = vector.broadcast %cst_50 : f32 to vector<1x128xf32>
    %197 = arith.addf %195, %196 : vector<1x128xf32>
    %198 = arith.mulf %197, %178 : vector<1x128xf32>
    %cst_51 = arith.constant 1.57079625 : f32
    %199 = vector.broadcast %cst_51 : f32 to vector<1x128xf32>
    %200 = arith.addf %198, %199 : vector<1x128xf32>
    %cst_52 = arith.constant 1.000000e+00 : f32
    %201 = vector.broadcast %cst_52 : f32 to vector<1x128xf32>
    %202 = arith.subf %201, %178 : vector<1x128xf32>
    %cst_53 = arith.constant 0.000000e+00 : f32
    %203 = vector.broadcast %cst_53 : f32 to vector<1x128xf32>
    %204 = arith.maximumf %202, %203 : vector<1x128xf32>
    %205 = math.sqrt %204 : vector<1x128xf32>
    %206 = arith.mulf %200, %205 : vector<1x128xf32>
    %cst_54 = arith.constant 0.000000e+00 : f32
    %207 = vector.broadcast %cst_54 : f32 to vector<1x128xf32>
    %208 = arith.cmpf olt, %177, %207 : vector<1x128xf32>
    %cst_55 = arith.constant 3.14159274 : f32
    %209 = vector.broadcast %cst_55 : f32 to vector<1x128xf32>
    %210 = arith.subf %209, %206 : vector<1x128xf32>
    %211 = arith.select %208, %210, %206 : vector<1x128xi1>, vector<1x128xf32>
    %cst_56 = arith.constant 2.000000e+00 : f32
    %212 = vector.broadcast %cst_56 : f32 to vector<1x128xf32>
    %213 = arith.mulf %212, %169 : vector<1x128xf32>
    %214 = arith.mulf %213, %127 : vector<1x128xf32>
    %215 = arith.addf %169, %127 : vector<1x128xf32>
    %cst_57 = arith.constant 9.99999974E-5 : f32
    %216 = vector.broadcast %cst_57 : f32 to vector<1x128xf32>
    %217 = arith.addf %215, %216 : vector<1x128xf32>
    %218 = tpu.reciprocal %217 : vector<1x128xf32> -> vector<1x128xf32>
    %219 = arith.mulf %214, %218 : vector<1x128xf32>
    %220 = arith.cmpf ole, %127, %169 : vector<1x128xf32>
    %221 = arith.extui %220 : vector<1x128xi1> to vector<1x128xi32>
    %222 = arith.sitofp %221 : vector<1x128xi32> to vector<1x128xf32>
    %cst_58 = arith.constant 1.000000e-30 : f32
    %cst_59 = arith.constant 1.000000e+00 : f32
    %223 = vector.broadcast %cst_58 : f32 to vector<1x128xf32>
    %224 = arith.maximumf %223, %7 : vector<1x128xf32>
    %225 = vector.broadcast %cst_59 : f32 to vector<1x128xf32>
    %226 = arith.minimumf %225, %224 : vector<1x128xf32>
    %227 = math.log %226 : vector<1x128xf32>
    %cst_60 = arith.constant 1.000000e-30 : f32
    %cst_61 = arith.constant 1.000000e+00 : f32
    %228 = vector.broadcast %cst_60 : f32 to vector<1x128xf32>
    %229 = arith.maximumf %228, %8 : vector<1x128xf32>
    %230 = vector.broadcast %cst_61 : f32 to vector<1x128xf32>
    %231 = arith.minimumf %230, %229 : vector<1x128xf32>
    %232 = math.log %231 : vector<1x128xf32>
    %233 = arith.mulf %222, %227 : vector<1x128xf32>
    %cst_62 = arith.constant 1.000000e+00 : f32
    %234 = vector.broadcast %cst_62 : f32 to vector<1x128xf32>
    %235 = arith.subf %234, %222 : vector<1x128xf32>
    %236 = arith.mulf %235, %232 : vector<1x128xf32>
    %237 = arith.addf %233, %236 : vector<1x128xf32>
    %238 = arith.mulf %211, %237 : vector<1x128xf32>
    %cst_63 = arith.constant 0.000000e+00 : f32
    %239 = vector.broadcast %cst_63 : f32 to vector<1x128xf32>
    %240 = arith.subf %239, %238 : vector<1x128xf32>
    %cst_64 = arith.constant 2.000000e+00 : f32
    %241 = vector.broadcast %cst_64 : f32 to vector<1x128xf32>
    %242 = arith.mulf %241, %222 : vector<1x128xf32>
    %cst_65 = arith.constant 1.000000e+00 : f32
    %243 = vector.broadcast %cst_65 : f32 to vector<1x128xf32>
    %244 = arith.subf %242, %243 : vector<1x128xf32>
    %245 = arith.mulf %244, %7 : vector<1x128xf32>
    %cst_66 = arith.constant 1.000000e+00 : f32
    %246 = vector.broadcast %cst_66 : f32 to vector<1x128xf32>
    %247 = arith.addf %246, %245 : vector<1x128xf32>
    %cst_67 = arith.constant 2.000000e+00 : f32
    %248 = vector.broadcast %cst_67 : f32 to vector<1x128xf32>
    %249 = arith.mulf %248, %222 : vector<1x128xf32>
    %cst_68 = arith.constant 1.000000e+00 : f32
    %250 = vector.broadcast %cst_68 : f32 to vector<1x128xf32>
    %251 = arith.subf %250, %249 : vector<1x128xf32>
    %252 = arith.mulf %251, %8 : vector<1x128xf32>
    %253 = arith.addf %247, %252 : vector<1x128xf32>
    %cst_69 = arith.constant 5.000000e-01 : f32
    %254 = vector.broadcast %cst_69 : f32 to vector<1x128xf32>
    %255 = arith.mulf %253, %254 : vector<1x128xf32>
    %256 = arith.mulf %255, %219 : vector<1x128xf32>
    %cst_70 = arith.constant 1.000000e+00 : f32
    %257 = vector.broadcast %cst_70 : f32 to vector<1x128xf32>
    %258 = arith.subf %257, %255 : vector<1x128xf32>
    %cst_71 = arith.constant 5.000000e-02 : f32
    %259 = vector.broadcast %cst_71 : f32 to vector<1x128xf32>
    %260 = arith.mulf %259, %258 : vector<1x128xf32>
    %261 = arith.addf %169, %127 : vector<1x128xf32>
    %262 = arith.mulf %260, %261 : vector<1x128xf32>
    %263 = arith.addf %256, %262 : vector<1x128xf32>
    %264 = tpu.iota {dimensions = array<i32: 1>} : vector<1x128xi32>
    %c128_i32 = arith.constant 128 : i32
    %265 = arith.muli %arg0, %c128_i32 : i32
    %266 = vector.broadcast %265 : i32 to vector<1x128xi32>
    %267 = arith.addi %266, %264 : vector<1x128xi32>
    %c8_i32 = arith.constant 8 : i32
    %268 = vector.broadcast %c8_i32 : i32 to vector<1x128xi32>
    %269 = arith.cmpi slt, %267, %268 : vector<1x128xi32>
    %270 = arith.extui %269 : vector<1x128xi1> to vector<1x128xi32>
    %271 = arith.sitofp %270 : vector<1x128xi32> to vector<1x128xf32>
    %c0_72 = arith.constant 0 : index
    %c0_73 = arith.constant 0 : index
    %272 = vector.load %arg10[%c0_72, %c0_73] : memref<3x128xf32, #tpu.memory_space<vmem>>, vector<1x128xf32>
    %273 = arith.mulf %240, %271 : vector<1x128xf32>
    %274 = arith.addf %272, %273 : vector<1x128xf32>
    %c0_74 = arith.constant 0 : index
    %c0_75 = arith.constant 0 : index
    %275 = vector.load %arg10[%c0_74, %c0_75] : memref<3x128xf32, #tpu.memory_space<vmem>>, vector<1x128xf32>
    tpu.vector_store %arg10[%c0_74, %c0_75], %274 {strides = array<i32>} : memref<3x128xf32, #tpu.memory_space<vmem>>, vector<1x128xf32>,
    %c1 = arith.constant 1 : index
    %c0_76 = arith.constant 0 : index
    %276 = vector.load %arg10[%c1, %c0_76] : memref<3x128xf32, #tpu.memory_space<vmem>>, vector<1x128xf32>
    %277 = arith.mulf %219, %271 : vector<1x128xf32>
    %278 = arith.addf %276, %277 : vector<1x128xf32>
    %c1_77 = arith.constant 1 : index
    %c0_78 = arith.constant 0 : index
    %279 = vector.load %arg10[%c1_77, %c0_78] : memref<3x128xf32, #tpu.memory_space<vmem>>, vector<1x128xf32>
    tpu.vector_store %arg10[%c1_77, %c0_78], %278 {strides = array<i32>} : memref<3x128xf32, #tpu.memory_space<vmem>>, vector<1x128xf32>,
    %c2 = arith.constant 2 : index
    %c0_79 = arith.constant 0 : index
    %280 = vector.load %arg10[%c2, %c0_79] : memref<3x128xf32, #tpu.memory_space<vmem>>, vector<1x128xf32>
    %281 = arith.mulf %263, %271 : vector<1x128xf32>
    %282 = arith.addf %280, %281 : vector<1x128xf32>
    %c2_80 = arith.constant 2 : index
    %c0_81 = arith.constant 0 : index
    %283 = vector.load %arg10[%c2_80, %c0_81] : memref<3x128xf32, #tpu.memory_space<vmem>>, vector<1x128xf32>
    tpu.vector_store %arg10[%c2_80, %c0_81], %282 {strides = array<i32>} : memref<3x128xf32, #tpu.memory_space<vmem>>, vector<1x128xf32>,
    %c0_i32_82 = arith.constant 0 : i32
    %284 = arith.cmpi eq, %arg0, %c0_i32_82 : i32
    %285 = arith.extui %284 : i1 to i32
    %c0_i32_83 = arith.constant 0 : i32
    %286 = arith.cmpi ne, %285, %c0_i32_83 : i32
    scf.if %286 {
      %c0_84 = arith.constant 0 : index
      %c0_85 = arith.constant 0 : index
      %287 = vector.load %arg10[%c0_84, %c0_85] : memref<3x128xf32, #tpu.memory_space<vmem>>, vector<1x128xf32>
      %288 = vector.shape_cast %287 : vector<1x128xf32> to vector<1x1x128xf32>
      %cst_86 = arith.constant dense<0.000000e+00> : vector<1xf32>
      %289 = vector.multi_reduction <add>, %288, %cst_86 [1, 2] : vector<1x1x128xf32> to vector<1xf32>
      %290 = vector.shape_cast %289 : vector<1xf32> to vector<1x1x1xf32>
      %291 = vector.extract %290[0, 0, 0] : f32 from vector<1x1x1xf32>
      %292 = vector.broadcast %291 : f32 to vector<1x1xf32>
      %c0_87 = arith.constant 0 : index
      %c0_88 = arith.constant 0 : index
      %293 = vector.load %arg7[%c0_87, %c0_88] : memref<1x1xf32, #tpu.memory_space<vmem>>, vector<1x1xf32>
      tpu.vector_store %arg7[%c0_87, %c0_88], %292 {strides = array<i32>} : memref<1x1xf32, #tpu.memory_space<vmem>>, vector<1x1xf32>,
      %c1_89 = arith.constant 1 : index
      %c0_90 = arith.constant 0 : index
      %294 = vector.load %arg10[%c1_89, %c0_90] : memref<3x128xf32, #tpu.memory_space<vmem>>, vector<1x128xf32>
      %295 = vector.shape_cast %294 : vector<1x128xf32> to vector<1x1x128xf32>
      %cst_91 = arith.constant dense<0.000000e+00> : vector<1xf32>
      %296 = vector.multi_reduction <add>, %295, %cst_91 [1, 2] : vector<1x1x128xf32> to vector<1xf32>
      %297 = vector.shape_cast %296 : vector<1xf32> to vector<1x1x1xf32>
      %298 = vector.extract %297[0, 0, 0] : f32 from vector<1x1x1xf32>
      %299 = vector.broadcast %298 : f32 to vector<1x1xf32>
      %c0_92 = arith.constant 0 : index
      %c0_93 = arith.constant 0 : index
      %300 = vector.load %arg8[%c0_92, %c0_93] : memref<1x1xf32, #tpu.memory_space<vmem>>, vector<1x1xf32>
      tpu.vector_store %arg8[%c0_92, %c0_93], %299 {strides = array<i32>} : memref<1x1xf32, #tpu.memory_space<vmem>>, vector<1x1xf32>,
      %c2_94 = arith.constant 2 : index
      %c0_95 = arith.constant 0 : index
      %301 = vector.load %arg10[%c2_94, %c0_95] : memref<3x128xf32, #tpu.memory_space<vmem>>, vector<1x128xf32>
      %302 = vector.shape_cast %301 : vector<1x128xf32> to vector<1x1x128xf32>
      %cst_96 = arith.constant dense<0.000000e+00> : vector<1xf32>
      %303 = vector.multi_reduction <add>, %302, %cst_96 [1, 2] : vector<1x1x128xf32> to vector<1xf32>
      %304 = vector.shape_cast %303 : vector<1xf32> to vector<1x1x1xf32>
      %305 = vector.extract %304[0, 0, 0] : f32 from vector<1x1x1xf32>
      %306 = vector.broadcast %305 : f32 to vector<1x1xf32>
      %c0_97 = arith.constant 0 : index
      %c0_98 = arith.constant 0 : index
      %307 = vector.load %arg9[%c0_97, %c0_98] : memref<1x1xf32, #tpu.memory_space<vmem>>, vector<1x1xf32>
      tpu.vector_store %arg9[%c0_97, %c0_98], %306 {strides = array<i32>} : memref<1x1xf32, #tpu.memory_space<vmem>>, vector<1x1xf32>,
    } else {
    }
    return
  }
  func.func @transform_0(%arg0: i32) -> (i32, i32) {
    %c0_i32 = arith.constant 0 : i32
    %c0_i32_0 = arith.constant 0 : i32
    return %c0_i32, %arg0 : i32, i32
  }
  func.func @transform_1(%arg0: i32) -> (i32, i32) {
    %c0_i32 = arith.constant 0 : i32
    %c0_i32_0 = arith.constant 0 : i32
    return %c0_i32, %arg0 : i32, i32
  }
  func.func @transform_2(%arg0: i32) -> (i32, i32) {
    %c0_i32 = arith.constant 0 : i32
    %c0_i32_0 = arith.constant 0 : i32
    return %c0_i32, %arg0 : i32, i32
  }
  func.func @transform_3(%arg0: i32) -> (i32, i32) {
    %c0_i32 = arith.constant 0 : i32
    %c0_i32_0 = arith.constant 0 : i32
    return %c0_i32, %arg0 : i32, i32
  }
  func.func @transform_4(%arg0: i32) -> (i32, i32) {
    %c0_i32 = arith.constant 0 : i32
    %c0_i32_0 = arith.constant 0 : i32
    return %c0_i32, %arg0 : i32, i32
  }
  func.func @transform_5(%arg0: i32) -> (i32, i32) {
    %c0_i32 = arith.constant 0 : i32
    %c0_i32_0 = arith.constant 0 : i32
    return %c0_i32, %arg0 : i32, i32
  }
  func.func @transform_6(%arg0: i32) -> (i32, i32) {
    %c0_i32 = arith.constant 0 : i32
    %c0_i32_0 = arith.constant 0 : i32
    %c0_i32_1 = arith.constant 0 : i32
    return %c0_i32, %c0_i32_0 : i32, i32
  }
  func.func @transform_7(%arg0: i32) -> (i32, i32) {
    %c0_i32 = arith.constant 0 : i32
    %c0_i32_0 = arith.constant 0 : i32
    %c0_i32_1 = arith.constant 0 : i32
    return %c0_i32, %c0_i32_0 : i32, i32
  }
  func.func @transform_8(%arg0: i32) -> (i32, i32) {
    %c0_i32 = arith.constant 0 : i32
    %c0_i32_0 = arith.constant 0 : i32
    %c0_i32_1 = arith.constant 0 : i32
    return %c0_i32, %c0_i32_0 : i32, i32
  }
}

</mosaic_0001>

<bundles_post_ra>
// kernel: tpu_custom_call.1
= control target key start
LH: loop header
LB: loop body
LE: loop exit
PB: predicated region body
PF: predicated region fallthrough
CT: control target
= control target key end

     0   :  { %14 = vsyncpa [#allocation4], 0  ;;  %s851_s0 = inlined_call_operand.hbm [shape: f32[3,128], index: 0, kind: input, shape index: {}]   ;;  %s852_s1 = inlined_call_operand.hbm [shape: f32[3,128], index: 1, kind: input, shape index: {}]   ;;  %s853_s2 = inlined_call_operand.hbm [shape: f32[3,128], index: 2, kind: input, shape index: {}]   ;;  %s854_s3 = inlined_call_operand.hbm [shape: f32[3,128], index: 3, kind: input, shape index: {}]   ;;  %s855_s4 = inlined_call_operand.vmem [shape: f32[1,128], index: 4, kind: input, shape index: {}]   ;;  %s856_s5 = inlined_call_operand.vmem [shape: f32[1,128], index: 5, kind: input, shape index: {}]   ;;  %s857_s6 = inlined_call_operand.hbm [shape: f32[1,1], index: 6, kind: output, shape index: {0}]   ;;  %s858_s7 = inlined_call_operand.hbm [shape: f32[1,1], index: 7, kind: output, shape index: {1}]   ;;  %s859_s8 = inlined_call_operand.hbm [shape: f32[1,1], index: 8, kind: output, shape index: {2}]  }
   0x1   :  { %15 = vsyncpa [#allocation7], 0 }
   0x2   :  { %16 = vsyncpa [#allocation10], 0 }
   0x3   :  { %17 = vsyncpa [#allocation5], 0  ;;  %s35_s29 = sshll.u32 %s852_s1, 4  ;;  %s36_s29 = int_to_ptr.hbm [resolvable:$true] %s35_s29 }
   0x4   :  { %18 = vsyncpa [#allocation13], 0  ;;  %s670_s30 = smov [#allocation6]   ;;  %s24_s12 = sshll.u32 %s851_s0, 4  ;;  %s25_s12 = int_to_ptr.hbm [resolvable:$true] %s24_s12 }
   0x5   :  { %s37_s9 = sshll.u32 %s670_s30, 4  ;;  %s671_s13 = smov [#allocation3]   ;;  %s38_s9 = int_to_ptr.vmem [resolvable:$true] %s37_s9 }
   0x6   :  { %40 = dma.hbm_to_vmem [thread:$0]  %s36_s29, 64, %s38_s9, [#allocation7]  }
   0x7   :  { %s26_s14 = sshll.u32 %s671_s13, 4  ;;  %s46_s17 = sshll.u32 %s853_s2, 4  ;;  %s27_s14 = int_to_ptr.vmem [resolvable:$true] %s26_s14  ;;  %s47_s17 = int_to_ptr.hbm [resolvable:$true] %s46_s17 }
   0x8   :  { %29 = dma.hbm_to_vmem [thread:$0]  %s25_s12, 64, %s27_s14, [#allocation4]  }
   0x9   :  { %s57_s19 = sshll.u32 %s854_s3, 4  ;;  %s672_s20 = smov [#allocation8]   ;;  %s58_s19 = int_to_ptr.hbm [resolvable:$true] %s57_s19 }
   0xa   :  { %s48_s21 = sshll.u32 %s672_s20, 4  ;;  %s673_s0 = smov [#allocation9]   ;;  %s49_s21 = int_to_ptr.vmem [resolvable:$true] %s48_s21 }
   0xb   :  { %51 = dma.hbm_to_vmem [thread:$0]  %s47_s17, 64, %s49_s21, [#allocation7]  }
   0xc   :  { %s59_s22 = sshll.u32 %s673_s0, 4  ;;  %s60_s22 = int_to_ptr.vmem [resolvable:$true] %s59_s22 }
   0xd   :  { %62 = dma.hbm_to_vmem [thread:$0]  %s58_s19, 64, %s60_s22, [#allocation10]  }
   0xe   :  { %660 = dma.done.wait [#allocation4], 64  }
   0xf   :  { %661 = vsyncadd [#allocation4], 4294967232 }
  0x10   :  { %662 = dma.done.wait [#allocation7], 128  }
  0x11   :  { %663 = vsyncadd [#allocation7], 4294967168 }
  0x12   :  { %664 = dma.done.wait [#allocation10], 64  }
  0x13   :  { %665 = vsyncadd [#allocation10], 4294967232  ;;  %v674_v0 = vmov 0.0   ;;  %v88_v1 = vld [vmem:[#allocation3] sm:$0x7]  ;;  %s411_s25 = sshll.u32 %s857_s6, 4  ;;  %s412_s25 = int_to_ptr.hbm [resolvable:$true] %s411_s25 }
  0x14   :  { %87 = vst [vmem:[#allocation2] sm:$0x7] %v674_v0  ;;  %v89_v2 = vld [vmem:[#allocation6] sm:$0x7]  ;;  %v90_v3 = vld [vmem:[#allocation8] sm:$0x7]  ;;  %v94_v5 = vmul.f32 %v88_v1, %v88_v1 }
  0x15   :  { %v91_v4 = vld [vmem:[#allocation9] sm:$0x7]  ;;  %v102_v6 = vmul.f32 %v89_v2, %v89_v2  ;;  %v110_v7 = vmul.f32 %v90_v3, %v90_v3  ;;  %v126_v28 = vmul.f32 %v90_v3, %v88_v1  ;;  %v142_v29 = vmul.f32 %v89_v2, %v88_v1  ;;  %s675_s26 = smov [#allocation11]   ;;  %s676_s29 = smov [#allocation12]  }
  0x16   :  { %v118_v8 = vmul.f32 %v91_v4, %v91_v4  ;;  %v96_v9 = vrot.slane %v94_v5, 1  ;;  %v99_v10 = vrot.slane %v94_v5, 2  ;;  %v134_v30 = vmul.f32 %v91_v4, %v89_v2  ;;  %s409_s27 = sshll.u32 %s675_s26, 4  ;;  %s420_s30 = sshll.u32 %s676_s29, 4  ;;  %s410_s27 = int_to_ptr.vmem [resolvable:$true] %s409_s27  ;;  %s421_s30 = int_to_ptr.vmem [resolvable:$true] %s420_s30 }
  0x17   :  { %v104_v11 = vrot.slane %v102_v6, 1  ;;  %v107_v12 = vrot.slane %v102_v6, 2  ;;  %v112_v13 = vrot.slane %v110_v7, 1  ;;  %v115_v14 = vrot.slane %v110_v7, 2  ;;  %s422_s11 = sshll.u32 %s858_s7, 4  ;;  %s677_s12 = smov [#allocation14]   ;;  %s423_s11 = int_to_ptr.hbm [resolvable:$true] %s422_s11 }
  0x18   :  { %v120_v15 = vrot.slane %v118_v8, 1  ;;  %v123_v16 = vrot.slane %v118_v8, 2  ;;  %v98_v17 = vadd.f32 %v96_v9, %v94_v5  ;;  %v128_v32 = vrot.slane %v126_v28, 1  ;;  %s431_s13 = sshll.u32 %s677_s12, 4  ;;  %s433_s16 = sshll.u32 %s859_s8, 4  ;;  %s432_s13 = int_to_ptr.vmem [resolvable:$true] %s431_s13  ;;  %s434_s16 = int_to_ptr.hbm [resolvable:$true] %s433_s16 }
  0x19   :  { %v106_v18 = vadd.f32 %v104_v11, %v102_v6  ;;  %v114_v19 = vadd.f32 %v112_v13, %v110_v7  ;;  %v144_v33 = vrot.slane %v142_v29, 1  ;;  %v136_v37 = vrot.slane %v134_v30, 1 }
  0x1a   :  { %v122_v20 = vadd.f32 %v120_v15, %v118_v8  ;;  %v101_v21 = vadd.f32 %v99_v10, %v98_v17  ;;  %v131_v39 = vrot.slane %v126_v28, 2  ;;  %v139_v40 = vrot.slane %v134_v30, 2 }
  0x1b   :  { %v109_v22 = vadd.f32 %v107_v12, %v106_v18  ;;  %v117_v23 = vadd.f32 %v115_v14, %v114_v19  ;;  %v130_v43 = vadd.f32 %v128_v32, %v126_v28  ;;  %v146_v44 = vadd.f32 %v144_v33, %v142_v29 }
  0x1c   :  { %v125_v24 = vadd.f32 %v123_v16, %v122_v20  ;;  %v147_v45 = vrot.slane %v142_v29, 2  ;;  %v138_v49 = vadd.f32 %v136_v37, %v134_v30  ;;  %v783_v29 = vld [vmem:[%s856_s5] sm:$0x1] }
  0x1d   :  { %v244_v25 = vmul.f32 %v109_v22, %v101_v21  ;;  %v150_v26 = vmul.f32 %v117_v23, %v101_v21  ;;  %v133_v55 = vadd.f32 %v131_v39, %v130_v43 }
  0x1e   :  { %v197_v27 = vmul.f32 %v125_v24, %v109_v22  ;;  %v149_v53 = vadd.f32 %v147_v45, %v146_v44  ;;  %v141_v58 = vadd.f32 %v139_v40, %v138_v49 }
  0x1f   :  { %474 = vrsqrt.f32 %v244_v25  ;;  %vm251_vm0 = vweird.f32 %v244_v25  ;;  %vm157_vm2 = vweird.f32 %v150_v26 }
  0x20   :  { %476 = vrsqrt.f32 %v150_v26  ;;  %vm204_vm4 = vweird.f32 %v197_v27 }
  0x21   :  { %478 = vrsqrt.f32 %v197_v27 }
  0x25   :  { %v475_v31 = vpop.eup %474 }
  0x26   :  { %v477_v34 = vpop.eup %476  ;;  %v246_v35 = vmul.f32 %v475_v31, %v244_v25  ;;  %vm252_vm1 = vweird.f32 %v475_v31  ;;  %v778_v25 = vld [vmem:[%s855_s4] sm:$0x1] }
  0x27   :  { %v479_v36 = vpop.eup %478  ;;  %v152_v38 = vmul.f32 %v477_v34, %v150_v26  ;;  %vm158_vm3 = vweird.f32 %v477_v34  ;;  %vm253_vm6 = vmor %vm251_vm0, %vm252_vm1 }
  0x28   :  { %v199_v41 = vmul.f32 %v479_v36, %v197_v27  ;;  %v247_v42 = vmul.f32 %v475_v31, %v246_v35  ;;  %vm205_vm5 = vweird.f32 %v479_v36  ;;  %vm159_vm7 = vmor %vm157_vm2, %vm158_vm3 }
  0x29   :  { %v153_v46 = vmul.f32 %v477_v34, %v152_v38  ;;  %vm206_vm8 = vmor %vm204_vm4, %vm205_vm5 }
  0x2a   :  { %v200_v47 = vmul.f32 %v479_v36, %v199_v41  ;;  %v248_v48 = vmul.f32 0.5, %v247_v42  ;;  %v317_v42 = vmax.f32 %v783_v29, 1e-30 }
  0x2b   :  { %v154_v50 = vmul.f32 0.5, %v153_v46 }
  0x2c   :  { %v201_v51 = vmul.f32 0.5, %v200_v47  ;;  %v249_v52 = vsub.f32 1.5, %v248_v48 }
  0x2d   :  { %v155_v54 = vsub.f32 1.5, %v154_v50 }
  0x2e   :  { %v202_v56 = vsub.f32 1.5, %v201_v51  ;;  %v250_v57 = vmul.f32 %v475_v31, %v249_v52 }
  0x2f   :  { %v156_v59 = vmul.f32 %v477_v34, %v155_v54 }
  0x30   :  { %v203_v60 = vmul.f32 %v479_v36, %v202_v56  ;;  %v254_v61 = vsel %vm253_vm6, %v475_v31, %v250_v57  ;;  %v318_v56 = vmin.f32 %v317_v42, 1.0 }
  0x31   :  { %v160_v62 = vsel %vm159_vm7, %v477_v34, %v156_v59  ;;  %v736_v63 = vmul.f32 %v254_v61, %v149_v53  ;;  %v313_v34 = vmax.f32 %v778_v25, 1e-30 }
  0x32   :  { %v738_v1 = vmul.f32 %v160_v62, %v133_v55  ;;  %v207_v2 = vsel %vm206_vm8, %v479_v36, %v203_v60  ;;  %vm364_vm8 = vcmask 1040384  }
  0x33   :  { %v740_v3 = vmul.f32 %v207_v2, %v141_v58  ;;  %v456_v4 = vclamps-f32 %v736_v63, 1.0  ;;  %v314_v49 = vmin.f32 %v313_v34, 1.0 }
  0x34   :  { %v454_v5 = vclamps-f32 %v738_v1, 1.0 }
  0x35   :  { %v455_v6 = vclamps-f32 %v740_v3, 1.0  ;;  %v747_v7 = vand.u32 2147483647, %v456_v4  ;;  %vm288_vm2 = vcmp.lt.f32.partialorder %v456_v4, 0.0 }
  0x36   :  { %v751_v8 = vand.u32 2147483647, %v454_v5  ;;  %vm194_vm15 = vcmp.lt.f32.partialorder %v454_v5, 0.0 }
  0x37   :  { %v755_v9 = vand.u32 2147483647, %v455_v6  ;;  %v259_v10 = vmul.f32 -0.0012624911, %v747_v7  ;;  %v273_v11 = vsub.f32 1.0, %v747_v7  ;;  %vm241_vm0 = vcmp.lt.f32.partialorder %v455_v6, 0.0 }
  0x38   :  { %v165_v12 = vmul.f32 -0.0012624911, %v751_v8  ;;  %v179_v13 = vsub.f32 1.0, %v751_v8 }
  0x39   :  { %v212_v14 = vmul.f32 -0.0012624911, %v755_v9  ;;  %v226_v15 = vsub.f32 1.0, %v755_v9  ;;  %v260_v16 = vadd.f32 0.00667009, %v259_v10  ;;  %v763_v17 = vmax.f32 %v273_v11, 0.0 }
  0x3a   :  { %v166_v18 = vadd.f32 0.00667009, %v165_v12  ;;  %v765_v19 = vmax.f32 %v179_v13, 0.0 }
  0x3b   :  { %v213_v20 = vadd.f32 0.00667009, %v212_v14  ;;  %v767_v21 = vmax.f32 %v226_v15, 0.0  ;;  %v261_v22 = vmul.f32 %v260_v16, %v747_v7  ;;  %480 = vrsqrt.f32 %v763_v17 }
  0x3c   :  { %v167_v23 = vmul.f32 %v166_v18, %v751_v8  ;;  %482 = vrsqrt.f32 %v765_v19  ;;  %vm188_vm9 = vcmp.eq.f32.partialorder %v765_v19, inf  ;;  %vm190_vm10 = vcmp.eq.f32.partialorder %v765_v19, 0.0 }
  0x3d   :  { %v214_v24 = vmul.f32 %v213_v20, %v755_v9  ;;  %484 = vrsqrt.f32 %v767_v21  ;;  %v262_v27 = vadd.f32 -0.017088126, %v261_v22  ;;  %v191_v14 = vand.u32 2147483648, %v765_v19 }
  0x3e   :  { %v168_v26 = vadd.f32 -0.017088126, %v167_v23  ;;  %486 = vlog2.f32 %v314_v49  ;;  %vm235_vm11 = vcmp.eq.f32.partialorder %v767_v21, inf  ;;  %vm282_vm12 = vcmp.eq.f32.partialorder %v763_v17, inf }
  0x3f   :  { %v215_v28 = vadd.f32 -0.017088126, %v214_v24  ;;  %v263_v31 = vmul.f32 %v262_v27, %v747_v7  ;;  %v238_v24 = vand.u32 2147483648, %v767_v21  ;;  %vm237_vm13 = vcmp.eq.f32.partialorder %v767_v21, 0.0 }
  0x40   :  { %v169_v30 = vmul.f32 %v168_v26, %v751_v8  ;;  %488 = vlog2.f32 %v318_v56  ;;  %vm284_vm14 = vcmp.eq.f32.partialorder %v763_v17, 0.0 }
  0x41   :  { %v481_v32 = vpop.eup %480  ;;  %v216_v33 = vmul.f32 %v215_v28, %v755_v9  ;;  %v264_v37 = vadd.f32 0.03089188, %v263_v31 }
  0x42   :  { %v483_v35 = vpop.eup %482  ;;  %v170_v36 = vadd.f32 0.03089188, %v169_v30  ;;  %v276_v38 = vmul.f32 %v481_v32, %v763_v17 }
  0x43   :  { %v485_v39 = vpop.eup %484  ;;  %v182_v40 = vmul.f32 %v483_v35, %v765_v19  ;;  %v217_v41 = vadd.f32 0.03089188, %v216_v33  ;;  %v265_v45 = vmul.f32 %v264_v37, %v747_v7  ;;  %v285_v37 = vand.u32 2147483648, %v763_v17 }
  0x44   :  { %v171_v43 = vmul.f32 %v170_v36, %v751_v8  ;;  %v229_v44 = vmul.f32 %v485_v39, %v767_v21  ;;  %v277_v46 = vmul.f32 %v481_v32, %v276_v38  ;;  %v487_v31 = vpop.eup %486 }
  0x45   :  { %v183_v47 = vmul.f32 %v483_v35, %v182_v40  ;;  %v218_v48 = vmul.f32 %v217_v41, %v755_v9  ;;  %v266_v52 = vadd.f32 -0.050174303, %v265_v45 }
  0x46   :  { %v172_v50 = vadd.f32 -0.050174303, %v171_v43  ;;  %v230_v51 = vmul.f32 %v485_v39, %v229_v44  ;;  %v278_v53 = vmul.f32 0.5, %v277_v46 }
  0x47   :  { %v184_v54 = vmul.f32 0.5, %v183_v47  ;;  %v219_v55 = vadd.f32 -0.050174303, %v218_v48  ;;  %v267_v59 = vmul.f32 %v266_v52, %v747_v7  ;;  %v340_v47 = vlaneseq }
  0x48   :  { %v173_v57 = vmul.f32 %v172_v50, %v751_v8  ;;  %v231_v58 = vmul.f32 0.5, %v230_v51  ;;  %v279_v60 = vsub.f32 1.5, %v278_v53 }
  0x49   :  { %v185_v61 = vsub.f32 1.5, %v184_v54  ;;  %v220_v62 = vmul.f32 %v219_v55, %v755_v9  ;;  %v268_v11 = vadd.f32 0.08897899, %v267_v59  ;;  %v341_v5 = vand.u32 127, %v340_v47 }
  0x4a   :  { %v174_v2 = vadd.f32 0.08897899, %v173_v57  ;;  %v232_v10 = vsub.f32 1.5, %v231_v58  ;;  %v280_v12 = vmul.f32 %v481_v32, %v279_v60 }
  0x4b   :  { %v186_v13 = vmul.f32 %v483_v35, %v185_v61  ;;  %v221_v15 = vadd.f32 0.08897899, %v220_v62  ;;  %v269_v20 = vmul.f32 %v268_v11, %v747_v7  ;;  %vm345_vm3 = vcmp.lt.s32.totalorder %v341_v5, 8 }
  0x4c   :  { %v175_v16 = vmul.f32 %v174_v2, %v751_v8  ;;  %v233_v18 = vmul.f32 %v485_v39, %v232_v10  ;;  %v281_v26 = vmul.f32 %v280_v12, %v763_v17  ;;  %v459_v62 = vsel %vm345_vm3, 1.0, %v674_v0  ;;  %v348_v12 = vld [vmem:[#allocation2] sm:$0x1] }
  0x4d   :  { %v187_v22 = vmul.f32 %v186_v13, %v765_v19  ;;  %v222_v23 = vmul.f32 %v221_v15, %v755_v9  ;;  %v270_v30 = vadd.f32 -0.2145988, %v269_v20 }
  0x4e   :  { %v176_v27 = vadd.f32 -0.2145988, %v175_v16  ;;  %v234_v28 = vmul.f32 %v233_v18, %v767_v21  ;;  %v283_v40 = vsel %vm282_vm12, %v763_v17, %v281_v26  ;;  %v316_v17 = vmul.f32 0.6931472, %v487_v31 }
  0x4f   :  { %v189_v32 = vsel %vm188_vm9, %v765_v19, %v187_v22  ;;  %v223_v33 = vadd.f32 -0.2145988, %v222_v23  ;;  %v271_v36 = vmul.f32 %v270_v30, %v747_v7  ;;  %v286_v45 = vsel %vm284_vm14, %v285_v37, %v283_v40  ;;  %v356_v40 = vld [vmem:[#allocation2 + $0x2] sm:$0x1] }
  0x50   :  { %v177_v34 = vmul.f32 %v176_v27, %v751_v8  ;;  %v236_v35 = vsel %vm235_vm11, %v767_v21, %v234_v28  ;;  %v192_v38 = vsel %vm190_vm10, %v191_v14, %v189_v32  ;;  %v489_v21 = vpop.eup %488  ;;  %vm376_vm9 = vcmask 0  }
  0x51   :  { %v224_v39 = vmul.f32 %v223_v33, %v755_v9  ;;  %v239_v42 = vsel %vm237_vm13, %v238_v24, %v236_v35  ;;  %v272_v43 = vadd.f32 1.5707963, %v271_v36  ;;  %v320_v51 = vmul.f32 0.6931472, %v489_v21  ;;  %v352_v33 = vld [vmem:[#allocation2 + $0x1] sm:$0x1] }
  0x52   :  { %v178_v41 = vadd.f32 1.5707963, %v177_v34 }
  0x53   :  { %v225_v8 = vadd.f32 1.5707963, %v224_v39  ;;  %v287_v19 = vmul.f32 %v286_v45, %v272_v43 }
  0x54   :  { %v193_v44 = vmul.f32 %v192_v38, %v178_v41 }
  0x55   :  { %v240_v7 = vmul.f32 %v239_v42, %v225_v8  ;;  %v289_v52 = vsub.f32 3.1415927, %v287_v19 }
  0x56   :  { %v195_v46 = vsub.f32 3.1415927, %v193_v44 }
  0x57   :  { %v242_v9 = vsub.f32 3.1415927, %v240_v7  ;;  %v290_v57 = vsel %vm288_vm2, %v289_v52, %v287_v19 }
  0x58   :  { %v196_v48 = vsel %vm194_vm15, %v195_v46, %v193_v44 }
  0x59   :  { %v243_v49 = vsel %vm241_vm0, %v242_v9, %v240_v7 }
  0x5a   :  { %v293_v50 = vadd.f32 %v243_v49, %v196_v48  ;;  %vm310_vm1 = vcmp.le.f32.partialorder %v196_v48, %v243_v49  ;;  %v291_v15 = vmul.f32 2.0, %v243_v49 }
  0x5b   :  { %v457_v1 = vsel %vm310_vm1, 1.0, %v674_v0 }
  0x5c   :  { %v294_v53 = vadd.f32 0.0001, %v293_v50  ;;  %v321_v54 = vmul.f32 %v457_v1, %v316_v17  ;;  %v322_v3 = vsub.f32 1.0, %v457_v1  ;;  %v327_v6 = vmul.f32 2.0, %v457_v1 }
  0x5d   :  { %v292_v0 = vmul.f32 %v291_v15, %v196_v48 }
  0x5e   :  { %490 = vrcp.f32 %v294_v53  ;;  %v323_v55 = vmul.f32 %v322_v3, %v320_v51  ;;  %v458_v56 = vadd.f32 -1.0, %v327_v6  ;;  %v331_v58 = vsub.f32 1.0, %v327_v6 }
  0x5f   :  { %v306_v16 = vand.u32 2147483648, %v294_v53  ;;  %vm300_vm4 = vweird.f32 %v294_v53  ;;  %v304_v22 = vand.u32 2147483647, %v294_v53 }
  0x60   :  { %v324_v59 = vadd.f32 %v323_v55, %v321_v54  ;;  %v329_v60 = vmul.f32 %v458_v56, %v778_v25  ;;  %v332_v63 = vmul.f32 %v331_v58, %v783_v29 }
  0x61   :  { %v307_v24 = vor.u32 1.1754944e-38, %v306_v16  ;;  %vm305_vm7 = vcmp.eq.f32.partialorder %v304_v22, 8.507059e+37 }
  0x62   :  { %v325_v4 = vmul.f32 %v324_v59, %v290_v57  ;;  %v330_v61 = vadd.f32 1.0, %v329_v60 }
  0x64   :  { %v491_v2 = vpop.eup %490  ;;  %v326_v10 = vsub.f32 0.0, %v325_v4  ;;  %v333_v11 = vadd.f32 %v332_v63, %v330_v61 }
  0x65   :  { %v296_v13 = vmul.f32 %v491_v2, %v294_v53  ;;  %vm301_vm5 = vweird.f32 %v491_v2 }
  0x66   :  { %v349_v14 = vmul.f32 %v459_v62, %v326_v10  ;;  %v334_v18 = vmul.f32 0.5, %v333_v11  ;;  %vm302_vm6 = vmor %vm300_vm4, %vm301_vm5 }
  0x67   :  { %v297_v20 = vsub.f32 1.0, %v296_v13 }
  0x68   :  { %v350_v25 = vadd.f32 %v349_v14, %v348_v12  ;;  %v336_v23 = vsub.f32 1.0, %v334_v18 }
  0x69   :  { %v298_v29 = vmul.f32 %v491_v2, %v297_v20 }
  0x6a   :  { %351 = vst [vmem:[#allocation2] sm:$0x1] %v350_v25  ;;  %v337_v27 = vmul.f32 0.05, %v336_v23 }
  0x6b   :  { %v299_v26 = vadd.f32 %v491_v2, %v298_v29 }
  0x6c   :  { %v338_v32 = vmul.f32 %v337_v27, %v293_v50 }
  0x6d   :  { %v303_v28 = vsel %vm302_vm6, %v491_v2, %v299_v26 }
  0x6e   :  { %v308_v30 = vsel %vm305_vm7, %v307_v24, %v303_v28 }
  0x6f   :  { %v309_v31 = vmul.f32 %v308_v30, %v292_v0 }
  0x71   :  { %v363_v34 = vld [vmem:[#allocation2] sm:$0x1]  ;;  %v353_v35 = vmul.f32 %v459_v62, %v309_v31  ;;  %v335_v36 = vmul.f32 %v334_v18, %v309_v31 }
  0x72   :  { %v365_v37 = vsel %vm364_vm8, %v363_v34, 0.0 }
  0x73   :  { %366 = vadd.xlane.f32.xlu0 %v365_v37  ;;  %v354_v38 = vadd.f32 %v353_v35, %v352_v33  ;;  %v339_v39 = vadd.f32 %v338_v32, %v335_v36 }
  0x75   :  { %355 = vst [vmem:[#allocation2 + $0x1] sm:$0x1] %v354_v38  ;;  %v357_v41 = vmul.f32 %v459_v62, %v339_v39 }
  0x77   :  { %v358_v42 = vadd.f32 %v357_v41, %v356_v40 }
  0x79   :  { %359 = vst [vmem:[#allocation2 + $0x2] sm:$0x1] %v358_v42 }
  0x7c   :  { %v378_v8 = vld [vmem:[#allocation2 + $0x1] sm:$0x1] }
  0x7d   :  { %v379_v43 = vsel %vm364_vm8, %v378_v8, 0.0 }
  0x7e   :  { %380 = vadd.xlane.f32.xlu0 %v379_v43 }
  0x80   :  { %v391_v44 = vld [vmem:[#allocation2 + $0x2] sm:$0x1] }
  0x81   :  { %v392_v45 = vsel %vm364_vm8, %v391_v44, 0.0 }
  0x82   :  { %393 = vadd.xlane.f32.xlu1 %v392_v45 }
  0xe6   :  { %v367_v21 = vpop.xlane.xlu0 %366 }
  0xe7   :  { %v368_v7 = vrot.slane %v367_v21, 4 }
  0xe9   :  { %v369_v46 = vadd.f32 %v368_v7, %v367_v21 }
  0xeb   :  { %v370_v9 = vrot.slane %v369_v46, 2 }
  0xed   :  { %v371_v19 = vadd.f32 %v370_v9, %v369_v46 }
  0xef   :  { %v372_v47 = vrot.slane %v371_v19, 1 }
  0xf1   :  { %v381_v48 = vpop.xlane.xlu0 %380  ;;  %v373_v17 = vadd.f32 %v372_v47, %v371_v19 }
  0xf2   :  { %v382_v49 = vrot.slane %v381_v48, 4 }
  0xf3   :  { %460 = vpush %v373_v17 }
  0xf4   :  { %v383_v50 = vadd.f32 %v382_v49, %v381_v48 }
  0xf5   :  { %v394_v51 = vpop.xlane.xlu1 %393 }
  0xf6   :  { %v384_v52 = vrot.slane %v383_v50, 2  ;;  %v395_v1 = vrot.slane %v394_v51, 4 }
  0xf8   :  { %v385_v5 = vadd.f32 %v384_v52, %v383_v50  ;;  %v396_v53 = vadd.f32 %v395_v1, %v394_v51 }
  0xfa   :  { %v397_v54 = vrot.slane %v396_v53, 2  ;;  %v386_v3 = vrot.slane %v385_v5, 1 }
  0xfc   :  { %v398_v6 = vadd.f32 %v397_v54, %v396_v53  ;;  %v387_v55 = vadd.f32 %v386_v3, %v385_v5 }
  0xfe   :  { %462 = vpush %v387_v55  ;;  %v399_v56 = vrot.slane %v398_v6, 1 }
 0x100   :  { %v400_v57 = vadd.f32 %v399_v56, %v398_v6 }
 0x102   :  { %464 = vpush %v400_v57 }
 0x124   :  { %s461_s28 = spop %460 }
 0x125   :  { %v375_v58 = vstv %s461_s28 }
 0x126   :  { %377 = vst.msk [vmem:[#allocation11] sm:$0x1] %vm376_vm9, %v375_v58 }
 0x127   :  { %414 = dma.vmem_to_hbm [thread:$0]  %s410_s27, 16, %s412_s25, [#allocation5]  }
 0x12f   :  { %s463_s6 = spop %462 }
 0x130   :  { %v389_v59 = vstv %s463_s6 }
 0x131   :  { %390 = vst.msk [vmem:[#allocation12] sm:$0x1] %vm376_vm9, %v389_v59 }
 0x132   :  { %425 = dma.vmem_to_hbm [thread:$0]  %s421_s30, 16, %s423_s11, [#allocation13]  }
 0x133   :  { %s465_s17 = spop %464 }
 0x134   :  { %v402_v60 = vstv %s465_s17 }
 0x135   :  { %403 = vst.msk [vmem:[#allocation14] sm:$0x1] %vm376_vm9, %v402_v60 }
 0x136   :  { %436 = dma.vmem_to_hbm [thread:$0]  %s432_s13, 16, %s434_s16, [#allocation13]  }
 0x137   :  { %666 = dma.done.wait [#allocation5], 16  }
 0x138   :  { %667 = vsyncadd [#allocation5], 4294967280 }
 0x139   :  { %668 = dma.done.wait [#allocation13], 32  }
 0x13a   :  { %669 = vsyncadd [#allocation13], 4294967264 }
 0x13b   :  { %449 = vsyncpa [#allocation4], 1 }
 0x13c   :  { %450 = vsyncpa [#allocation7], 1 }
 0x13d   :  { %451 = vsyncpa [#allocation10], 1 }
 0x13e   :  { %452 = vsyncpa [#allocation5], 1 }
 0x13f   :  { %453 = vsyncpa [#allocation13], 1 }

</bundles_post_ra>
